<compile_context>
chip_gen: v7x
topology: tpu7x:2x2x1
jax: 0.10.0
libtpu: 0.0.40
codegen_flags: <defaults>
</compile_context>

<pallas_src>
import numpy as np
import jax
import jax.numpy as jnp
from jax.experimental import pallas as pl
from jax.experimental.pallas import tpu as pltpu


def _lft_pos_kernel(a_ref, hw_ref, o_ref):
    """a_ref: (td, 1) pre-scaled angular column for this grid step (broadcasts
    over lanes).  hw_ref: (td, LT) pre-scaled lane-chunk of the fused h⊕w
    table.  One VPU add per element; the kernel is HBM-store-bound."""
    o_ref[...] = a_ref[...] + hw_ref[...]


def _axis_table(length, token_dim, temperature):
    """(length, token_dim) table: concat([sin(even cols), cos(odd cols)], -1),
    the exact PyTorch construction, evaluated once at trace time in numpy."""
    k = np.arange(token_dim, dtype=np.float64)
    grid_dim = float(temperature) ** (2.0 * np.floor(k / 2.0) / float(token_dim))
    pos = np.arange(length, dtype=np.float64)[:, None] / grid_dim      # (L, td)
    return np.concatenate([np.sin(pos[:, 0::2]), np.cos(pos[:, 1::2])], axis=1)


def _pick_lane_tile(hw_pad, token_dim, max_block_bytes=2 << 20):
    """Largest multiple-of-128 divisor of hw_pad whose (td, LT) f32 block stays
    under max_block_bytes (keeps double-buffered output inside v5e's 16 MiB
    scoped-VMEM default and v7x's 64 MiB physical VMEM)."""
    m = hw_pad // 128
    d_cap = max(1, (max_block_bytes // (token_dim * 4)) // 128)
    for d in range(min(m, d_cap), 0, -1):
        if m % d == 0:
            return d * 128
    return 128


def lft_position_encoding(x, dim, *, temperature, token_dim):
    """x: (B, 1, A, H, W); dim: non-empty subset of [2, 3, 4].

    Returns the positional encoding of shape (1, token_dim, A, H, W), float32.
    """
    assert x.ndim == 5, "the object of position encoding requires 5-dim tensor!"
    assert len(dim) >= 1 and all(d in (2, 3, 4) for d in dim)
    A, H, W = int(x.shape[2]), int(x.shape[3]), int(x.shape[4])
    HW = H * W
    scale = 1.0 / float(len(dim))

    # ---- trace-time constants (numpy): compact per-axis tables --------------
    a_col = np.zeros((A, token_dim))
    h_col = np.zeros((H, token_dim))
    w_col = np.zeros((W, token_dim))
    for d in dim:
        t = _axis_table(int(x.shape[d]), token_dim, temperature)
        if d == 2:
            a_col = a_col + t
        elif d == 3:
            h_col = h_col + t
        else:
            w_col = w_col + t

    # Fused (h ⊕ w) table, (td, H*W), lane index = h*W + w, pre-scaled; lanes
    # padded to a multiple of 128 so every store is an unmasked vst.
    HW_pad = ((HW + 127) // 128) * 128
    hw = (h_col[:, None, :] + w_col[None, :, :]).reshape(HW, token_dim).T * scale
    hw_tab = np.zeros((token_dim, HW_pad), dtype=np.float32)
    hw_tab[:, :HW] = hw
    # Angular table, (A, td, 1): one tiny (td, 1) column per grid step over A.
    a_tab = (a_col * scale).astype(np.float32)[:, :, None]

    LT = _pick_lane_tile(HW_pad, token_dim)
    C = HW_pad // LT
    # A innermost: the resident hw chunk only re-fetches when the lane chunk
    # changes; both axes are independent -> "parallel" (v7x megacore).
    grid = (C, A)

    out = pl.pallas_call(
        _lft_pos_kernel,
        out_shape=jax.ShapeDtypeStruct((token_dim, A * HW_pad), jnp.float32),
        grid=grid,
        in_specs=[
            pl.BlockSpec((None, token_dim, 1), lambda c, a: (a, 0, 0)),
            pl.BlockSpec((token_dim, LT), lambda c, a: (0, c)),
        ],
        out_specs=pl.BlockSpec((token_dim, LT), lambda c, a: (0, a * C + c)),
        compiler_params=pltpu.CompilerParams(
            dimension_semantics=("parallel", "parallel")),
    )(jnp.asarray(a_tab), jnp.asarray(hw_tab))

    # (td, A*HW_pad) -> (1, td, A, H, W).  When H*W is a multiple of 128 the
    # slice is a no-op and this is a pure metadata reshape (the rearrange
    # 'b 1 a h w dim -> b dim a h w' comes for free from the kernel layout);
    # otherwise one wrapper-side slice drops the pad lanes.
    out = out.reshape(token_dim, A, HW_pad)[:, :, :HW]
    return out.reshape(1, token_dim, A, H, W)


def _reference(x, dim, temperature, token_dim):
    """Pure-JAX port of the PyTorch forward (6-axis-consistent interpretation)."""
    k = jnp.arange(token_dim, dtype=jnp.float32)
    grid_dim = jnp.asarray(temperature, jnp.float32) ** (2.0 * jnp.floor(k / 2.0) / token_dim)
    position = None
    for d in dim:
        L = x.shape[d]
        pos = jnp.arange(L, dtype=jnp.float32)[:, None] / grid_dim
        pos = jnp.concatenate([jnp.sin(pos[:, 0::2]), jnp.cos(pos[:, 1::2])], axis=1)
        shp = [1, 1, 1, 1, 1, token_dim]
        shp[d] = L
        pos = pos.reshape(shp)
        position = pos if position is None else position + pos
    position = jnp.squeeze(position, axis=1)              # (1, A, H, W, td)
    position = jnp.transpose(position, (0, 4, 1, 2, 3))   # (1, td, A, H, W)
    return position / float(len(dim))


if __name__ == "__main__":
    B, A, H, W = 2, 4, 16, 16       # H*W = 256 -> lane-dense fast path
    token_dim = 32
    temperature = 10000.0

    x = jax.random.normal(jax.random.PRNGKey(0), (B, 1, A, H, W), dtype=jnp.float32)

    # Full dim set.
    dim = [2, 3, 4]
    out = lft_position_encoding(x, dim, temperature=temperature, token_dim=token_dim)
    out = jax.block_until_ready(out)
    ref = _reference(x, dim, temperature, token_dim)
    assert out.shape == (1, token_dim, A, H, W), out.shape
    assert jnp.allclose(out, ref, atol=1e-4, rtol=1e-4), float(jnp.max(jnp.abs(out - ref)))

    # Subset of dims (angular table all-zero).
    dim2 = [3, 4]
    out2 = lft_position_encoding(x, dim2, temperature=temperature, token_dim=token_dim)
    out2 = jax.block_until_ready(out2)
    ref2 = _reference(x, dim2, temperature, token_dim)
    assert jnp.allclose(out2, ref2, atol=1e-4, rtol=1e-4), float(jnp.max(jnp.abs(out2 - ref2)))

    # Ragged H*W (not a multiple of 128): exercises the padded-lane fallback.
    x3 = jax.random.normal(jax.random.PRNGKey(0), (1, 1, 3, 5, 7), dtype=jnp.float32)
    dim3 = [2, 4]
    out3 = lft_position_encoding(x3, dim3, temperature=temperature, token_dim=token_dim)
    out3 = jax.block_until_ready(out3)
    ref3 = _reference(x3, dim3, temperature, token_dim)
    assert out3.shape == (1, token_dim, 3, 5, 7), out3.shape
    assert jnp.allclose(out3, ref3, atol=1e-4, rtol=1e-4), float(jnp.max(jnp.abs(out3 - ref3)))

    print("KERNEL_OK")
</pallas_src>

<mosaic_0001>
module attributes {stable_mosaic.version = 11 : i64} {
  func.func @_lft_pos_kernel(%arg0: i32, %arg1: i32, %arg2: memref<1x32x1xf32, #tpu.memory_space<vmem>>, %arg3: memref<32x256xf32, #tpu.memory_space<vmem>>, %arg4: memref<32x256xf32, #tpu.memory_space<vmem>>) attributes {dimension_semantics = [#tpu.dimension_semantics<parallel>, #tpu.dimension_semantics<parallel>], iteration_bounds = array<i64: 1, 4>, scalar_prefetch = 0 : i64, scratch_operands = 0 : i64, tpu.core_type = #tpu.core_type<tc>, window_params = [{transform_indices = @transform_0, window_bounds = array<i64: 1, 32, 1>}, {transform_indices = @transform_1, window_bounds = array<i64: 32, 256>}, {transform_indices = @transform_2, window_bounds = array<i64: 32, 256>}]} {
    %c0 = arith.constant 0 : index
    %c0_0 = arith.constant 0 : index
    %c0_1 = arith.constant 0 : index
    %0 = vector.load %arg2[%c0, %c0_0, %c0_1] : memref<1x32x1xf32, #tpu.memory_space<vmem>>, vector<1x32x1xf32>
    %1 = vector.shape_cast %0 : vector<1x32x1xf32> to vector<32x1xf32>
    %c0_2 = arith.constant 0 : index
    %c0_3 = arith.constant 0 : index
    %2 = vector.load %arg3[%c0_2, %c0_3] : memref<32x256xf32, #tpu.memory_space<vmem>>, vector<32x256xf32>
    %3 = vector.broadcast %1 : vector<32x1xf32> to vector<32x256xf32>
    %4 = arith.addf %3, %2 : vector<32x256xf32>
    %c0_4 = arith.constant 0 : index
    %c0_5 = arith.constant 0 : index
    %5 = vector.load %arg4[%c0_4, %c0_5] : memref<32x256xf32, #tpu.memory_space<vmem>>, vector<32x256xf32>
    tpu.vector_store %arg4[%c0_4, %c0_5], %4 {strides = array<i32>} : memref<32x256xf32, #tpu.memory_space<vmem>>, vector<32x256xf32>,
    return
  }
  func.func @transform_0(%arg0: i32, %arg1: i32) -> (i32, i32, i32) {
    %c0_i32 = arith.constant 0 : i32
    %c0_i32_0 = arith.constant 0 : i32
    %c0_i32_1 = arith.constant 0 : i32
    return %arg1, %c0_i32, %c0_i32_0 : i32, i32, i32
  }
  func.func @transform_1(%arg0: i32, %arg1: i32) -> (i32, i32) {
    %c0_i32 = arith.constant 0 : i32
    %c0_i32_0 = arith.constant 0 : i32
    return %c0_i32, %arg0 : i32, i32
  }
  func.func @transform_2(%arg0: i32, %arg1: i32) -> (i32, i32) {
    %c1_i32 = arith.constant 1 : i32
    %0 = arith.muli %arg1, %c1_i32 : i32
    %1 = arith.addi %0, %arg0 : i32
    %c0_i32 = arith.constant 0 : i32
    %c0_i32_0 = arith.constant 0 : i32
    return %c0_i32, %1 : i32, i32
  }
}

</mosaic_0001>

<bundles_post_ra>
// kernel: tpu_custom_call.1
= control target key start
LH: loop header
LB: loop body
LE: loop exit
PB: predicated region body
PF: predicated region fallthrough
CT: control target
= control target key end

     0   :  { %7 = vsyncpa [#allocation3], 0  ;;  %s649_s0 = inlined_call_operand.vmem [shape: f32[4,32,1], index: 0, kind: input, shape index: {}]   ;;  %s650_s1 = inlined_call_operand.vmem [shape: f32[32,256], index: 1, kind: input, shape index: {}]   ;;  %s651_s2 = inlined_call_operand.hbm [shape: f32[32,1024], index: 2, kind: output, shape index: {}]  }
   0x1   :  { %9 = vsyncpa [#allocation3 + $0x1], 0  ;;  %s506_s9 = smov 0   ;;  %s508_s10 = smov 0  }
   0x2   :  { %s510_s11 = smov 0   ;;  %s512_s12 = smov 0  }
   0x3   :  { %s514_s13 = smov 0   ;;  %s516_s14 = smov 0  }
   0x4 LB: > { %s329_s15 = sadd.s32 4294967295, %s484_s14   ;;  %s330_s16 = sadd.s32 4294967294, %s484_s14   ;;  %s484_s14 = sphi %s516_s14, %s15_s14   ;;  %s480_s13 = sphi %s514_s13, %s658_s13   ;;  %s476_s12 = sphi %s512_s12, %s657_s12   ;;  %s472_s11 = sphi %s510_s11, %s656_s11   ;;  %s468_s10 = sphi %s508_s10, %s655_s10   ;;  %s464_s9 = sphi %s506_s9, %s654_s9  }
   0x5   : > { %s24_s17 = sadd.s32 1, %s480_s13  ;;  %s88_s18 = sadd.s32 1, %s472_s11 }
   0x6   : > { %p25_p0 = scmp.ge.s32.totalorder %s24_s17, 4  ;;  %p98_p1 = scmp.ne.s32.totalorder %s472_s11, %s468_s10 }
   0x7   : > { %p99_p2 = scmp.eq.s32.totalorder %s329_s15, 3  ;;  %p104_p3 = scmp.ne.s32.totalorder %s468_s10, %s464_s9 }
   0x8   : > { %s660_s17 = smov (%p25_p0, %s24_s17), 0  ;;  %p105_p5 = scmp.eq.s32.totalorder %s330_s16, 3 }
   0x9   : > { %p546_p4 = por %p99_p2, %p98_p1  ;;  %s85_s20 = ssub.s32 %s480_s13, %s660_s17 }
   0xa   : > { %p334_p6 = scmp.ge.s32.totalorder %s484_s14, 1  ;;  %p86_p7 = scmp.eq.s32.totalorder %s85_s20, 0 }
   0xb   : > { %p553_p8 = por %p105_p5, %p104_p3  ;;  %p140_p9 = scmp.lt.s32.totalorder %s484_s14, 5 }
   0xc   : > { %s559_s22 = scalar_select %p86_p7, %s472_s11, %s88_s18  }
   0xd   : > { %p141_p10 = pnand %p334_p6, %p140_p9 }
   0xe   : > { %p167_p11 = scmp.lt.s32.totalorder (!%p141_p10), %s476_s12, 3  ;;  %v486_v0 = vmov (!%p141_p10), 0   ;;  %s164_s28 = sand.u32 (!%p141_p10), 1, %s468_s10   ;;  %v188_v5 = vld [vmem:[%s650_s1 + $0x20] sm:$0xff] (!%p141_p10)  ;;  %v189_v6 = vld [vmem:[%s650_s1 + $0x28] sm:$0xff] (!%p141_p10)  ;;  %v190_v15 = vld [vmem:[%s650_s1 + $0x30] sm:$0xff] (!%p141_p10) }
   0xf   : > { %144 = sbr.rel (%p141_p10) target bundleno = 178 (0xb2), region = 28  ;;  %405 = vset.pattern.permute.xlu1 (!%p141_p10), %v486_v0  ;;  %404 = vset.pattern.permute.xlu0 (!%p141_p10), %v486_v0  ;;  %s335_s29 = sshll.u32 (!%p141_p10), %s164_s28, 6  ;;  %v184_v7 = vld [vmem:[%s650_s1] sm:$0xff] (!%p141_p10)  ;;  %v185_v8 = vld [vmem:[%s650_s1 + $0x8] sm:$0xff] (!%p141_p10)  ;;  %v191_v16 = vld [vmem:[%s650_s1 + $0x38] sm:$0xff] (!%p141_p10) }
  0x10   : > { %s166_s16 = scalar_lea.vmem (!%p141_p10), [#allocation2], %s335_s29  ;;  %v186_v17 = vld [vmem:[%s650_s1 + $0x10] sm:$0xff] (!%p141_p10)  ;;  %v187_v18 = vld [vmem:[%s650_s1 + $0x18] sm:$0xff] (!%p141_p10)  ;;  %s603_s6 = scalar_lea.sflag (!%p141_p10), [#allocation3], %s164_s28 }
  0x11   : > { %s243_s18 = sshll.u32 (!%p141_p10), %s166_s16, 4  ;;  %s487_s8 = smov (!%p141_p10), [#allocation2]   ;;  %s594_s18 = int_to_ptr.vmem [resolvable:$true] %s243_s18 }
  0x12   : > { %s406_s7 = scalar_lea.vmem (!%p141_p10), %s594_s18, 1024  ;;  %s410_s15 = sshll.u32 (!%p141_p10), %s487_s8, 4  ;;  %s411_s15 = int_to_ptr.vmem [resolvable:$false] %s410_s15 }
  0x13   : > { %p407_p12 = scmp.ne.s32.totalorder (!%p141_p10), %s594_s18, %s406_s7  ;;  %s412_s20 = scalar_lea.vmem (!%p141_p10), %s411_s15, 2048 }
  0x14   : > { %p413_p1 = scmp.lt.s32.totalorder (!%p141_p10), %s594_s18, %s411_s15  ;;  %p414_p2 = scmp.lt.s32.totalorder (!%p141_p10), %s412_s20, %s406_s7 }
  0x15   : > { %p408_p13 = pnand (!%p141_p10), %p407_p12, %p546_p4 }
  0x16   : > { %s168_s23 = scalar_select %p167_p11, %s476_s12, 3 }
  0x17   : > { %p409_p0 = pneg %p408_p13  ;;  %p415_p3 = por %p414_p2, %p413_p1 }
  0x18   : > { %s343_s24 = sshll.u32 %s168_s23, 5 }
  0x19   : > { %s171_s27 = scalar_lea.vmem %s649_s0, %s343_s24  ;;  %s344_s24 = sshll.u32 %s476_s12, 8 }
  0x1a   : > { %v182_v1 = vld [vmem:[%s171_s27 + $0x10] sm:$0xff]  ;;  %v180_v2 = vld [vmem:[%s171_s27] sm:$0xff]  ;;  %v183_v3 = vld [vmem:[%s171_s27 + $0x18] sm:$0xff]  ;;  %s599_s5 = scalar_lea.hbm %s651_s2, %s344_s24  ;;  %p416_p5 = pnand %p415_p3, %p409_p0 }
  0x1b   : > { %204 = vperm.xlu1 %405, %v182_v1   ;;  %194 = vperm.xlu0 %404, %v180_v2   ;;  %v181_v4 = vld [vmem:[%s171_s27 + $0x8] sm:$0xff] }
  0x1f   : > { %209 = vperm.xlu1 %405, %v183_v3   ;;  %199 = vperm.xlu0 %404, %v181_v4  }
  0x9a   : > { %v205_v9 = vpop.permute.xlu1 %204  ;;  %v195_v10 = vpop.permute.xlu0 %194 }
  0x9b   : > { %v216_v11 = vadd.f32 %v205_v9, %v188_v5  ;;  %v217_v12 = vadd.f32 %v205_v9, %v189_v6  ;;  %v212_v13 = vadd.f32 %v195_v10, %v184_v7  ;;  %v213_v14 = vadd.f32 %v195_v10, %v185_v8 }
  0x9d   : > { %224 = vst [vmem:[%s166_s16 + $0x20] sm:$0xff] %v216_v11  ;;  %225 = vst [vmem:[%s166_s16 + $0x28] sm:$0xff] %v217_v12 }
  0x9e   : > { %220 = vst [vmem:[%s166_s16] sm:$0xff] %v212_v13  ;;  %221 = vst [vmem:[%s166_s16 + $0x8] sm:$0xff] %v213_v14  ;;  %v210_v19 = vpop.permute.xlu1 %209  ;;  %v200_v20 = vpop.permute.xlu0 %199 }
  0x9f   : > { %v218_v21 = vadd.f32 %v210_v19, %v190_v15  ;;  %v219_v22 = vadd.f32 %v210_v19, %v191_v16  ;;  %v214_v23 = vadd.f32 %v200_v20, %v186_v17  ;;  %v215_v24 = vadd.f32 %v200_v20, %v187_v18 }
  0xa1   : > { %226 = vst [vmem:[%s166_s16 + $0x30] sm:$0xff] %v218_v21  ;;  %227 = vst [vmem:[%s166_s16 + $0x38] sm:$0xff] %v219_v22 }
  0xa2   : > { %222 = vst [vmem:[%s166_s16 + $0x10] sm:$0xff] %v214_v23  ;;  %223 = vst [vmem:[%s166_s16 + $0x18] sm:$0xff] %v215_v24 }
  0xa3   : > { %419 = shalt.err (!%p416_p5)
}
  0xa4   : > { %s420_s28 = scalar_lea.hbm %s599_s5, 1024  ;;  %s424_s24 = scalar_lea.hbm %s651_s2, 4096 }
  0xa5   : > { %p421_p6 = scmp.ne.s32.totalorder %s599_s5, %s420_s28  ;;  %p425_p10 = scmp.lt.u32.totalorder %s599_s5, %s651_s2 }
  0xa6   : > { %p426_p11 = scmp.lt.u32.totalorder %s424_s24, %s420_s28  ;;  %p428_p13 = scmp.lt.u32.totalorder %s420_s28, %s599_s5 }
  0xa7   : > { %p422_p7 = pnand %p421_p6, %p546_p4 }
  0xa8   : > { %p427_p12 = por %p426_p11, %p425_p10 }
  0xa9   : > { %p423_p9 = pneg %p422_p7 }
  0xaa   : > { %p429_p0 = por %p428_p13, %p427_p12 }
  0xac   : > { %p430_p1 = pnand %p429_p0, %p423_p9 }
  0xae   : > { %433 = shalt.err (!%p430_p1)
}
  0xaf   : > { %s488_s27 = smov 256   ;;  %s489_s30 = smov 1024  }
  0xb0   : > { %s490_s29 = smov 16  }
  0xb1   : > { %345 = dma.vmem_to_hbm [thread:$0]  (%p546_p4), %s594_s18, 1024, %s599_s5, %s603_s6, %s488_s27, %s489_s30, %s490_s29  }
  0xb2 PF: > { %p351_p2 = scmp.ge.s32.totalorder %s484_s14, 2  ;;  %s258_s3 = sand.u32 1, %s464_s9  }
  0xb3   : > { %s259_s12 = scalar_lea.sflag [#allocation3], %s258_s3 }
  0xb4   : > { %p348_p3 = pnand %p351_p2, %p553_p8 }
  0xb6   : > { %459 = dma.done.wait (!%p348_p3), %s259_s12, 1024  }
  0xb7   : > { %461 = vsyncadd (!%p348_p3), %s259_s12, 4294966272  ;;  %s15_s14 = sadd.s32 1, %s484_s14   ;;  %s654_s9 = smov %s468_s10 }
  0xb8   : > { %p12_p5 = scmp.ge.s32.totalorder %s15_s14, 6   ;;  %s655_s10 = smov %s472_s11 }
  0xb9   : > { %s656_s11 = smov %s559_s22  ;;  %s657_s12 = smov %s480_s13 }
  0xba   : > { %s658_s13 = smov %s660_s17  ;;  %14 = sbr.rel (!%p12_p5) target bundleno = 4 (0x4), region = 66 }
  0xc1   :  { %264 = vsyncpa [#allocation3], 1 }
  0xc2   :  { %266 = vsyncpa [#allocation3 + $0x1], 1 }

</bundles_post_ra>
